<compile_context>
chip_gen: v6e
topology: v6e:2x2x1
jax: 0.10.0
libtpu: 0.0.40
codegen_flags: <defaults>
</compile_context>

<pallas_src>
import math
import functools

import jax
import jax.numpy as jnp
from jax import lax
from jax.experimental import pallas as pl
from jax.experimental.pallas import tpu as pltpu


# ----------------------------------------------------------------------------
# Buffer construction (plain JAX glue) -- mirrors __init__
# ----------------------------------------------------------------------------
def make_positional_encoding(d_model: int = 256, max_len: int = 30) -> jnp.ndarray:
    position = jnp.arange(max_len, dtype=jnp.float32)[:, None]            # [max_len, 1]
    div_term = jnp.exp(
        jnp.arange(0, d_model, 2, dtype=jnp.float32) * (-math.log(10000.0) / d_model)
    )                                                                      # [d_model//2]
    pe = jnp.zeros((max_len, 1, d_model), dtype=jnp.float32)
    pe = pe.at[:, 0, 0::2].set(jnp.sin(position * div_term))
    pe = pe.at[:, 0, 1::2].set(jnp.cos(position * div_term))
    return pe                                                              # [max_len, 1, d_model]


# ----------------------------------------------------------------------------
# Pallas kernels
# ----------------------------------------------------------------------------
def _pe_add_kernel(x_ref, pe_ref, o_ref):
    # x_ref: (S, tb, D); pe_ref: (S, 1, D) (already in x.dtype) -> broadcast add.
    o_ref[...] = x_ref[...] + pe_ref[...]


def _fmix32(h):
    # murmur3 32-bit finalizer: cheap VPU-only avalanche, lowers on any platform.
    h = h ^ (h >> jnp.uint32(16))
    h = h * jnp.uint32(0x85EBCA6B)
    h = h ^ (h >> jnp.uint32(13))
    h = h * jnp.uint32(0xC2B2AE35)
    h = h ^ (h >> jnp.uint32(16))
    return h


def _pe_add_dropout_kernel(seed_ref, x_ref, pe_ref, o_ref, *,
                           threshold, scale, batch_tile, total_batch, d_model):
    # Training path: add PE, then inverted dropout.
    y = x_ref[...] + pe_ref[...]
    shape = y.shape                                   # (S, tb, D)

    # Counter-based PRNG keyed on the GLOBAL element index -> independent,
    # non-repeating bits per tile; same results regardless of tiling.
    b0 = pl.program_id(0) * batch_tile
    s_idx = lax.broadcasted_iota(jnp.int32, shape, 0)
    b_idx = lax.broadcasted_iota(jnp.int32, shape, 1) + b0
    d_idx = lax.broadcasted_iota(jnp.int32, shape, 2)
    flat = (s_idx * total_batch + b_idx) * d_model + d_idx
    h = _fmix32(flat.astype(jnp.uint32) * jnp.uint32(0x9E3779B1)
                + seed_ref[0].astype(jnp.uint32))

    # P(h < threshold) = p  ->  drop; keep with prob 1-p, scale by 1/(1-p).
    keep = h >= jnp.uint32(threshold)
    o_ref[...] = jnp.where(
        keep, y * jnp.asarray(scale, y.dtype), jnp.zeros((), y.dtype)
    ).astype(o_ref.dtype)


# ----------------------------------------------------------------------------
# Tile-size heuristic: ~2048 flattened (row, D) rows per block, capped at
# ~4 MiB per block so the 2x-double-buffered in+out pipeline (+pe) stays well
# under every generation's scoped-VMEM budget (v5e 16 MiB default, v7x 32 MiB).
# ----------------------------------------------------------------------------
def _auto_batch_tile(S, B, D, itemsize, *, sub, target_rows=2048,
                     max_block_bytes=4 * 1024 * 1024):
    if B <= sub:
        return B                     # full batch axis (block dim == array dim)
    tb = max(sub, ((target_rows // max(S, 1)) // sub) * sub)
    while tb > sub and S * tb * D * itemsize > max_block_bytes:
        tb -= sub
    return min(tb, B)


# ----------------------------------------------------------------------------
# Wrapper
# ----------------------------------------------------------------------------
def positional_encoding_forward(x, pe, *, dropout_p=0.1, training=False, seed=0,
                                batch_tile=None):
    """x: [seq_len, batch, d_model]; pe: [max_len, 1, d_model] (f32 buffer)."""
    S, B, D = x.shape
    assert S <= pe.shape[0] and D == pe.shape[2]

    itemsize = jnp.dtype(x.dtype).itemsize
    sub = {4: 8, 2: 16, 1: 32}.get(itemsize, 8)      # dtype-aware sublane multiple

    if batch_tile is None:
        tb = _auto_batch_tile(S, B, D, itemsize, sub=sub)
        # Megacore (v7x): keep >=2 grid steps when the batch allows it so the
        # "parallel" grid axis can be sharded across both TensorCores.
        if B >= 2 * sub:
            half = (((B + 1) // 2) + sub - 1) // sub * sub
            tb = min(tb, half)
    else:
        tb = batch_tile
    tb = min(tb, B)
    # TPU layout constraint: second-to-last block dim must be a multiple of the
    # packed sublane count or equal to the full batch extent.
    assert tb == B or tb % sub == 0, f"batch_tile {tb} must be a multiple of {sub} or == batch"

    grid = (pl.cdiv(B, tb),)

    # Pre-slice + pre-cast pe once in the wrapper: the (S,1,D) block is tiny,
    # stays VMEM-resident (constant index map), and needs no per-step cast.
    pe_s = pe[:S].astype(x.dtype)

    x_spec = pl.BlockSpec((S, tb, D), lambda j: (0, j, 0))
    pe_spec = pl.BlockSpec((S, 1, D), lambda j: (0, 0, 0))
    out_shape = jax.ShapeDtypeStruct((S, B, D), x.dtype)

    # Bandwidth-bound streaming op: tell XLA's scheduler so it can overlap
    # neighbouring HLO (e.g. next layer's weight prefetch) with it.
    cost = pl.CostEstimate(
        flops=S * B * D,
        transcendentals=0,
        bytes_accessed=2 * S * B * D * itemsize + S * D * itemsize,
    )

    cparams = pltpu.CompilerParams(
        dimension_semantics=("parallel",),      # shard grid across TCs (v7x)
        vmem_limit_bytes=32 * 1024 * 1024,      # explicit scoped-VMEM budget
    )

    if not training or dropout_p == 0.0:
        # Eval mode: nn.Dropout is the identity.
        return pl.pallas_call(
            _pe_add_kernel,
            out_shape=out_shape,
            grid=grid,
            in_specs=[x_spec, pe_spec],
            out_specs=x_spec,
            input_output_aliases={0: 0},        # in-place iff caller donates x
            compiler_params=cparams,
            cost_estimate=cost,
        )(x, pe_s)

    # Training mode. (Matches torch dropout's distribution, not its bits.)
    p = float(dropout_p)
    threshold = min(max(int(round(p * 2.0 ** 32)), 0), 2 ** 32 - 1)
    scale = 1.0 / (1.0 - p)
    seed_arr = jnp.asarray([seed], dtype=jnp.int32)
    kern = functools.partial(
        _pe_add_dropout_kernel,
        threshold=threshold, scale=scale,
        batch_tile=tb, total_batch=B, d_model=D,
    )
    return pl.pallas_call(
        kern,
        out_shape=out_shape,
        grid=grid,
        in_specs=[pl.BlockSpec(memory_space=pltpu.MemorySpace.SMEM), x_spec, pe_spec],
        out_specs=x_spec,
        input_output_aliases={1: 0},            # x is flat input index 1
        compiler_params=cparams,
        cost_estimate=cost,
    )(seed_arr, x, pe_s)


# ----------------------------------------------------------------------------
# Demo / self-test
# ----------------------------------------------------------------------------
if __name__ == "__main__":
    d_model = 256      # module default; multiple of 128 -> lane-dense stores
    max_len = 30
    seq_len = 8
    batch = 32

    key = jax.random.PRNGKey(0)
    x = jax.random.normal(key, (seq_len, batch, d_model), dtype=jnp.float32)
    pe = make_positional_encoding(d_model=d_model, max_len=max_len)

    ref = x + pe[:seq_len]

    # Eval mode, auto tile (auto heuristic gives a 2-step "parallel" grid here).
    out = positional_encoding_forward(x, pe, dropout_p=0.1, training=False)
    out = jax.block_until_ready(out)
    assert out.shape == (seq_len, batch, d_model)
    assert jnp.allclose(out, ref, atol=1e-6), "eval-path mismatch vs reference"

    # Eval mode with an explicit batch tile -> 4-step pipelined grid.
    out_tiled = positional_encoding_forward(x, pe, training=False, batch_tile=8)
    out_tiled = jax.block_until_ready(out_tiled)
    assert jnp.allclose(out_tiled, ref, atol=1e-6), "tiled eval-path mismatch"

    # Training mode: every element must be 0 or (x + pe) / (1 - p).
    p = 0.1
    out_drop = positional_encoding_forward(
        x, pe, dropout_p=p, training=True, seed=123, batch_tile=8)
    out_drop = jax.block_until_ready(out_drop)
    scaled = ref / (1.0 - p)
    ok = jnp.isclose(out_drop, 0.0) | jnp.isclose(out_drop, scaled, rtol=1e-5, atol=1e-5)
    assert bool(jnp.all(ok)), "dropout values are not {0, scaled(x+pe)}"
    keep_frac = float(jnp.mean((out_drop != 0.0).astype(jnp.float32)))
    assert 0.85 < keep_frac < 0.95, f"unexpected keep fraction {keep_frac}"

    print("KERNEL_OK")
</pallas_src>

<mosaic_0001>
module attributes {stable_mosaic.version = 11 : i64} {
  func.func @_pe_add_kernel(%arg0: i32, %arg1: memref<8x16x256xf32, #tpu.memory_space<vmem>>, %arg2: memref<8x1x256xf32, #tpu.memory_space<vmem>>, %arg3: memref<8x16x256xf32, #tpu.memory_space<vmem>>) attributes {dimension_semantics = [#tpu.dimension_semantics<parallel>], iteration_bounds = array<i64: 2>, scalar_prefetch = 0 : i64, scratch_operands = 0 : i64, tpu.core_type = #tpu.core_type<tc>, window_params = [{transform_indices = @transform_0, window_bounds = array<i64: 8, 16, 256>}, {pipeline_mode = #tpu.pipeline_mode<synchronous>, transform_indices = @transform_1, window_bounds = array<i64: 8, 1, 256>}, {transform_indices = @transform_2, window_bounds = array<i64: 8, 16, 256>}]} {
    %c0 = arith.constant 0 : index
    %c0_0 = arith.constant 0 : index
    %c0_1 = arith.constant 0 : index
    %0 = vector.load %arg1[%c0, %c0_0, %c0_1] : memref<8x16x256xf32, #tpu.memory_space<vmem>>, vector<8x16x256xf32>
    %c0_2 = arith.constant 0 : index
    %c0_3 = arith.constant 0 : index
    %c0_4 = arith.constant 0 : index
    %1 = vector.load %arg2[%c0_2, %c0_3, %c0_4] : memref<8x1x256xf32, #tpu.memory_space<vmem>>, vector<8x1x256xf32>
    %2 = vector.broadcast %1 : vector<8x1x256xf32> to vector<8x16x256xf32>
    %3 = arith.addf %0, %2 : vector<8x16x256xf32>
    %c0_5 = arith.constant 0 : index
    %c0_6 = arith.constant 0 : index
    %c0_7 = arith.constant 0 : index
    %4 = vector.load %arg3[%c0_5, %c0_6, %c0_7] : memref<8x16x256xf32, #tpu.memory_space<vmem>>, vector<8x16x256xf32>
    tpu.vector_store %arg3[%c0_5, %c0_6, %c0_7], %3 {strides = array<i32>} : memref<8x16x256xf32, #tpu.memory_space<vmem>>, vector<8x16x256xf32>,
    return
  }
  func.func @transform_0(%arg0: i32) -> (i32, i32, i32) {
    %c0_i32 = arith.constant 0 : i32
    %c0_i32_0 = arith.constant 0 : i32
    %c0_i32_1 = arith.constant 0 : i32
    return %c0_i32, %arg0, %c0_i32_0 : i32, i32, i32
  }
  func.func @transform_1(%arg0: i32) -> (i32, i32, i32) {
    %c0_i32 = arith.constant 0 : i32
    %c0_i32_0 = arith.constant 0 : i32
    %c0_i32_1 = arith.constant 0 : i32
    %c0_i32_2 = arith.constant 0 : i32
    return %c0_i32, %c0_i32_0, %c0_i32_1 : i32, i32, i32
  }
  func.func @transform_2(%arg0: i32) -> (i32, i32, i32) {
    %c0_i32 = arith.constant 0 : i32
    %c0_i32_0 = arith.constant 0 : i32
    %c0_i32_1 = arith.constant 0 : i32
    return %c0_i32, %arg0, %c0_i32_0 : i32, i32, i32
  }
}

</mosaic_0001>

<bundles_post_ra>
// kernel: tpu_custom_call.1
= control target key start
LH: loop header
LB: loop body
LE: loop exit
PB: predicated region body
PF: predicated region fallthrough
CT: control target
= control target key end

     0   :  { %7 = vsyncpa [#allocation3], 0  ;;  %s895_s0 = inlined_call_operand.hbm [shape: f32[8,32,256], index: 0, kind: input, shape index: {}, may-alias: {0,2}]   ;;  %s896_s1 = inlined_call_operand.vmem [shape: f32[8,1,256], index: 1, kind: input, shape index: {}]   ;;  %s897_s2 = inlined_call_operand.hbm [shape: f32[8,32,256], index: 2, kind: output, shape index: {}, may-alias: {0,2}]  }
   0x1   :  { %9 = vsyncpa [#allocation3 + $0x1], 0 }
   0x2   :  { %10 = vsyncpa [#allocation4], 0 }
   0x3   :  { %12 = vsyncpa [#allocation4 + $0x1], 0  ;;  %s650_s9 = smov 0   ;;  %s652_s10 = smov 0  }
   0x4   :  { %s654_s11 = smov 0   ;;  %s656_s12 = smov 0  }
   0x5 LB: > { %s671_s13 = sadd.s32 4294967295, %s620_s12   ;;  %s493_s14 = sadd.s32 4294967294, %s620_s12   ;;  %s620_s12 = sphi %s656_s12, %s905_s12   ;;  %s616_s11 = sphi %s654_s11, %s904_s11   ;;  %s612_s10 = sphi %s652_s10, %s903_s10   ;;  %s608_s9 = sphi %s650_s9, %s902_s9  }
   0x6   : > { %s675_s15 = sadd.s32 1, %s620_s12   ;;  %s25_s16 = sadd.s32 1, %s616_s11 }
   0x7   : > { %s22_s17 = ssub.s32 %s620_s12, %s675_s15  ;;  %p32_p0 = scmp.ne.s32.totalorder %s616_s11, %s612_s10 }
   0x8   : > { %p23_p1 = scmp.eq.s32.totalorder %s22_s17, 0  ;;  %p33_p2 = scmp.eq.s32.totalorder %s620_s12, 0 }
   0x9   : > { %p38_p3 = scmp.ne.s32.totalorder %s612_s10, %s608_s9  ;;  %p39_p4 = scmp.eq.s32.totalorder %s671_s13, 0 }
   0xa   : > { %s687_s18 = scalar_select %p23_p1, %s616_s11, %s25_s16  }
   0xb   : > { %p689_p5 = por %p33_p2, %p32_p0  ;;  %p693_p6 = por %p39_p4, %p38_p3 }
   0xc   : > { %p83_p7 = scmp.eq.s32.totalorder %s671_s13, 1  ;;  %p89_p8 = scmp.eq.s32.totalorder %s493_s14, 1 }
   0xd   : > { %p495_p11 = scmp.ge.s32.totalorder %s620_s12, 2 }
   0xe   : > { %p698_p9 = por %p83_p7, %p32_p0  ;;  %p702_p10 = por %p89_p8, %p38_p3 }
   0xf   : > { %108 = sbr.rel (%p495_p11) target bundleno = 33 (0x21), region = 20 }
  0x14   : > { %s112_s23 = sand.u32 1, %s616_s11   ;;  %s512_s24 = sshll.u32 %s620_s12, 9 }
  0x15   : > { %s496_s25 = sshll.u32 %s112_s23, 8  ;;  %s123_s28 = scalar_lea.hbm %s895_s0, %s512_s24 }
  0x16   : > { %s515_s29 = scalar_select %p689_p5, [#allocation0], [#allocation10] }
  0x17   : > { %s116_s30 = scalar_lea.vmem [#allocation2], %s496_s25  ;;  %s622_s5 = smov 1024  }
  0x18   : > { %s136_s3 = sshll.u32 %s116_s30, 4  ;;  %s128_s4 = sld [smem:[%s515_s29]]   ;;  %s137_s3 = int_to_ptr.vmem [resolvable:$true] %s136_s3 }
  0x19   : > { %516 = sst [smem:[#allocation7]] (%p689_p5), %s622_s5  ;;  %s623_s6 = smov 512  }
  0x1a   : > { %517 = sst [smem:[#allocation7 + $0x1]] (%p689_p5), %s623_s6  ;;  %s624_s7 = smov 2  }
  0x1b   : > { %518 = sst [smem:[#allocation7 + $0x2]] (%p689_p5), %s624_s7  ;;  %s625_s8 = smov 256  }
  0x1c   : > { %519 = sst [smem:[#allocation7 + $0x3]] (%p689_p5), %s625_s8  ;;  %s626_s16 = smov 16  }
  0x1d   : > { %520 = sst [smem:[#allocation7 + $0x4]] (%p689_p5), %s625_s8  ;;  %s113_s24 = scalar_lea.sflag [#allocation3], %s112_s23 }
  0x1e   : > { %s500_s14 = sshll.u32 %s128_s4, 26  ;;  %521 = sst [smem:[#allocation7 + $0x5]] (%p689_p5), %s626_s16 }
  0x1f   : > { %s501_s17 = sadd.s32 134217728, %s500_s14  ;;  %s627_s25 = smov 131072  }
  0x20   : > { %522 = dma.general (%p689_p5), %s123_s28, 4096, %s137_s3, %s113_s24, %s627_s25, [#allocation7], %s501_s17, 0  }
  0x21 PF: > { %p502_p12 = scmp.ge.s32.totalorder %s620_s12, 1  ;;  %p157_p13 = scmp.lt.s32.totalorder %s620_s12, 3 }
  0x23   : > { %p158_p0 = pnand %p502_p12, %p157_p13 }
  0x24   : > { %s733_s26 = sand.u32 (!%p158_p0), 1, %s612_s10  }
  0x25   : > { %161 = sbr.rel (%p158_p0) target bundleno = 78 (0x4e), region = 28  ;;  %s503_s27 = sshll.u32 (!%p158_p0), %s733_s26, 8 }
  0x26   : > { %s164_s29 = scalar_lea.sflag (!%p158_p0), [#allocation3], %s733_s26  ;;  %s739_s23 = scalar_lea.vmem (!%p158_p0), [#allocation2], %s503_s27 }
  0x2a   : > { %599 = dma.done.wait (%p693_p6), %s164_s29, 4096  }
  0x2b   : > { %601 = vsyncadd (%p693_p6), %s164_s29, 4294963200  ;;  %v238_v0 = vlaneseq  ;;  %v190_v4 = vld [vmem:[%s739_s23] sm:$0xff]  ;;  %v191_v6 = vld [vmem:[%s739_s23 + $0x8] sm:$0xff]  ;;  %s778_s5 = scalar_lea.vmem [#allocation5], %s503_s27 }
  0x2c   : > { %v222_v5 = vld [vmem:[%s896_s1] sm:$0x3]  ;;  %v192_v9 = vld [vmem:[%s739_s23 + $0x10] sm:$0xff]  ;;  %v193_v10 = vld [vmem:[%s739_s23 + $0x18] sm:$0xff] }
  0x2d   : > { %v239_v1 = vshrl.u32 %v238_v0, 7  ;;  %v194_v11 = vld [vmem:[%s739_s23 + $0x20] sm:$0xff]  ;;  %v195_v13 = vld [vmem:[%s739_s23 + $0x28] sm:$0xff]  ;;  %v196_v14 = vld [vmem:[%s739_s23 + $0x30] sm:$0xff] }
  0x2e   : > { %v223_v12 = vld [vmem:[%s896_s1 + $0x2] sm:$0x3]  ;;  %v197_v19 = vld [vmem:[%s739_s23 + $0x38] sm:$0xff]  ;;  %v224_v21 = vld [vmem:[%s896_s1 + $0x4] sm:$0x3] }
  0x2f   : > { %v745_v2 = vsub.s32 0, %v239_v1  ;;  %v747_v3 = vsub.s32 1, %v239_v1  ;;  %v198_v20 = vld [vmem:[%s739_s23 + $0x40] sm:$0xff]  ;;  %v199_v25 = vld [vmem:[%s739_s23 + $0x48] sm:$0xff]  ;;  %v200_v27 = vld [vmem:[%s739_s23 + $0x50] sm:$0xff] }
  0x30   : > { %v201_v28 = vld [vmem:[%s739_s23 + $0x58] sm:$0xff]  ;;  %v202_v29 = vld [vmem:[%s739_s23 + $0x60] sm:$0xff]  ;;  %v203_v31 = vld [vmem:[%s739_s23 + $0x68] sm:$0xff] }
  0x31   : > { %v241_v7 = vrot.slane %v222_v5, %v745_v2  ;;  %v245_v8 = vrot.slane %v222_v5, %v747_v3  ;;  %v249_v22 = vrot.slane %v223_v12, %v745_v2  ;;  %v253_v23 = vrot.slane %v223_v12, %v747_v3  ;;  %v225_v30 = vld [vmem:[%s896_s1 + $0x6] sm:$0x3]  ;;  %v204_v36 = vld [vmem:[%s739_s23 + $0x70] sm:$0xff]  ;;  %v205_v37 = vld [vmem:[%s739_s23 + $0x78] sm:$0xff] }
  0x32   : > { %v257_v24 = vrot.slane %v224_v21, %v745_v2  ;;  %v261_v26 = vrot.slane %v224_v21, %v747_v3  ;;  %v206_v38 = vld [vmem:[%s739_s23 + $0x80] sm:$0xff]  ;;  %v226_v43 = vld [vmem:[%s896_s1 + $0x8] sm:$0x3]  ;;  %v208_v45 = vld [vmem:[%s739_s23 + $0x90] sm:$0xff]  ;;  %v265_v46 = vrot.slane %v225_v30, %v745_v2  ;;  %v269_v47 = vrot.slane %v225_v30, %v747_v3 }
  0x33   : > { %v318_v15 = vadd.f32 %v241_v7, %v190_v4  ;;  %v319_v16 = vadd.f32 %v245_v8, %v191_v6  ;;  %v320_v17 = vadd.f32 %v241_v7, %v192_v9  ;;  %v321_v18 = vadd.f32 %v245_v8, %v193_v10  ;;  %v207_v44 = vld [vmem:[%s739_s23 + $0x88] sm:$0xff]  ;;  %v209_v50 = vld [vmem:[%s739_s23 + $0x98] sm:$0xff]  ;;  %v210_v51 = vld [vmem:[%s739_s23 + $0xa0] sm:$0xff] }
  0x34   : > { %v322_v32 = vadd.f32 %v249_v22, %v194_v11  ;;  %v323_v33 = vadd.f32 %v253_v23, %v195_v13  ;;  %v324_v34 = vadd.f32 %v249_v22, %v196_v14  ;;  %v325_v35 = vadd.f32 %v253_v23, %v197_v19  ;;  %v227_v52 = vld [vmem:[%s896_s1 + $0xa] sm:$0x3]  ;;  %v212_v56 = vld [vmem:[%s739_s23 + $0xb0] sm:$0xff]  ;;  %v213_v57 = vld [vmem:[%s739_s23 + $0xb8] sm:$0xff] }
  0x35   : > { %350 = vst [vmem:[%s778_s5] sm:$0xff] %v318_v15  ;;  %351 = vst [vmem:[%s778_s5 + $0x8] sm:$0xff] %v319_v16  ;;  %v326_v39 = vadd.f32 %v257_v24, %v198_v20  ;;  %v327_v40 = vadd.f32 %v261_v26, %v199_v25  ;;  %v328_v41 = vadd.f32 %v257_v24, %v200_v27  ;;  %v211_v54 = vld [vmem:[%s739_s23 + $0xa8] sm:$0xff]  ;;  %v214_v5 = vld [vmem:[%s739_s23 + $0xc0] sm:$0xff] }
  0x36   : > { %352 = vst [vmem:[%s778_s5 + $0x10] sm:$0xff] %v320_v17  ;;  %353 = vst [vmem:[%s778_s5 + $0x18] sm:$0xff] %v321_v18  ;;  %v329_v42 = vadd.f32 %v261_v26, %v201_v28  ;;  %v273_v48 = vrot.slane %v226_v43, %v745_v2  ;;  %v277_v49 = vrot.slane %v226_v43, %v747_v3  ;;  %v228_v62 = vld [vmem:[%s896_s1 + $0xc] sm:$0x3]  ;;  %v216_v7 = vld [vmem:[%s739_s23 + $0xd0] sm:$0xff] }
  0x37   : > { %354 = vst [vmem:[%s778_s5 + $0x20] sm:$0xff] %v322_v32  ;;  %355 = vst [vmem:[%s778_s5 + $0x28] sm:$0xff] %v323_v33  ;;  %v281_v53 = vrot.slane %v227_v52, %v745_v2  ;;  %v285_v55 = vrot.slane %v227_v52, %v747_v3  ;;  %v330_v58 = vadd.f32 %v265_v46, %v202_v29  ;;  %v215_v6 = vld [vmem:[%s739_s23 + $0xc8] sm:$0xff]  ;;  %v217_v12 = vld [vmem:[%s739_s23 + $0xd8] sm:$0xff] }
  0x38   : > { %356 = vst [vmem:[%s778_s5 + $0x30] sm:$0xff] %v324_v34  ;;  %357 = vst [vmem:[%s778_s5 + $0x38] sm:$0xff] %v325_v35  ;;  %v331_v59 = vadd.f32 %v269_v47, %v203_v31  ;;  %v332_v60 = vadd.f32 %v265_v46, %v204_v36  ;;  %v333_v61 = vadd.f32 %v269_v47, %v205_v37  ;;  %v218_v13 = vld [vmem:[%s739_s23 + $0xe0] sm:$0xff]  ;;  %v229_v14 = vld [vmem:[%s896_s1 + $0xe] sm:$0x3] }
  0x39   : > { %358 = vst [vmem:[%s778_s5 + $0x40] sm:$0xff] %v326_v39  ;;  %359 = vst [vmem:[%s778_s5 + $0x48] sm:$0xff] %v327_v40  ;;  %v334_v63 = vadd.f32 %v273_v48, %v206_v38  ;;  %v335_v0 = vadd.f32 %v277_v49, %v207_v44  ;;  %v336_v1 = vadd.f32 %v273_v48, %v208_v45  ;;  %v219_v18 = vld [vmem:[%s739_s23 + $0xe8] sm:$0xff]  ;;  %v220_v20 = vld [vmem:[%s739_s23 + $0xf0] sm:$0xff] }
  0x3a   : > { %360 = vst [vmem:[%s778_s5 + $0x50] sm:$0xff] %v328_v41  ;;  %361 = vst [vmem:[%s778_s5 + $0x58] sm:$0xff] %v329_v42  ;;  %v337_v4 = vadd.f32 %v277_v49, %v209_v50  ;;  %v338_v8 = vadd.f32 %v281_v53, %v210_v51  ;;  %v339_v9 = vadd.f32 %v285_v55, %v211_v54  ;;  %v221_v21 = vld [vmem:[%s739_s23 + $0xf8] sm:$0xff]  ;;  %s383_s23 = scalar_lea.sflag [#allocation4], %s733_s26 }
  0x3b   : > { %362 = vst [vmem:[%s778_s5 + $0x60] sm:$0xff] %v330_v58  ;;  %363 = vst [vmem:[%s778_s5 + $0x68] sm:$0xff] %v331_v59  ;;  %v340_v10 = vadd.f32 %v281_v53, %v212_v56  ;;  %v341_v11 = vadd.f32 %v285_v55, %v213_v57  ;;  %v289_v15 = vrot.slane %v228_v62, %v745_v2 }
  0x3c   : > { %364 = vst [vmem:[%s778_s5 + $0x70] sm:$0xff] %v332_v60  ;;  %365 = vst [vmem:[%s778_s5 + $0x78] sm:$0xff] %v333_v61  ;;  %v293_v16 = vrot.slane %v228_v62, %v747_v3  ;;  %v297_v17 = vrot.slane %v229_v14, %v745_v2  ;;  %v301_v19 = vrot.slane %v229_v14, %v747_v3 }
  0x3d   : > { %366 = vst [vmem:[%s778_s5 + $0x80] sm:$0xff] %v334_v63  ;;  %367 = vst [vmem:[%s778_s5 + $0x88] sm:$0xff] %v335_v0  ;;  %v342_v22 = vadd.f32 %v289_v15, %v214_v5  ;;  %v344_v23 = vadd.f32 %v289_v15, %v216_v7 }
  0x3e   : > { %368 = vst [vmem:[%s778_s5 + $0x90] sm:$0xff] %v336_v1  ;;  %369 = vst [vmem:[%s778_s5 + $0x98] sm:$0xff] %v337_v4  ;;  %v343_v2 = vadd.f32 %v293_v16, %v215_v6  ;;  %v345_v24 = vadd.f32 %v293_v16, %v217_v12  ;;  %v346_v25 = vadd.f32 %v297_v17, %v218_v13 }
  0x3f   : > { %370 = vst [vmem:[%s778_s5 + $0xa0] sm:$0xff] %v338_v8  ;;  %371 = vst [vmem:[%s778_s5 + $0xa8] sm:$0xff] %v339_v9  ;;  %v347_v3 = vadd.f32 %v301_v19, %v219_v18  ;;  %v348_v26 = vadd.f32 %v297_v17, %v220_v20  ;;  %v349_v27 = vadd.f32 %v301_v19, %v221_v21 }
  0x40   : > { %372 = vst [vmem:[%s778_s5 + $0xb0] sm:$0xff] %v340_v10  ;;  %373 = vst [vmem:[%s778_s5 + $0xb8] sm:$0xff] %v341_v11 }
  0x41   : > { %374 = vst [vmem:[%s778_s5 + $0xc0] sm:$0xff] %v342_v22  ;;  %375 = vst [vmem:[%s778_s5 + $0xc8] sm:$0xff] %v343_v2 }
  0x42   : > { %376 = vst [vmem:[%s778_s5 + $0xd0] sm:$0xff] %v344_v23  ;;  %377 = vst [vmem:[%s778_s5 + $0xd8] sm:$0xff] %v345_v24 }
  0x43   : > { %378 = vst [vmem:[%s778_s5 + $0xe0] sm:$0xff] %v346_v25  ;;  %379 = vst [vmem:[%s778_s5 + $0xe8] sm:$0xff] %v347_v3 }
  0x44   : > { %380 = vst [vmem:[%s778_s5 + $0xf0] sm:$0xff] %v348_v26  ;;  %381 = vst [vmem:[%s778_s5 + $0xf8] sm:$0xff] %v349_v27 }
  0x45   : > { %s514_s19 = sshll.u32 %s671_s13, 9  ;;  %s407_s28 = sshll.u32 %s778_s5, 4  ;;  %s408_s28 = int_to_ptr.vmem [resolvable:$true] %s407_s28 }
  0x46   : > { %s396_s3 = scalar_lea.hbm %s897_s2, %s514_s19  ;;  %s628_s4 = smov 512  }
  0x47   : > { %524 = sst [smem:[#allocation9]] (%p698_p9), %s628_s4  ;;  %s629_s26 = smov 1024  }
  0x48   : > { %525 = sst [smem:[#allocation9 + $0x1]] (%p698_p9), %s629_s26  ;;  %s630_s6 = smov 2  }
  0x49   : > { %526 = sst [smem:[#allocation9 + $0x2]] (%p698_p9), %s630_s6  ;;  %s631_s7 = smov 256  }
  0x4a   : > { %527 = sst [smem:[#allocation9 + $0x3]] (%p698_p9), %s631_s7  ;;  %s632_s13 = smov 16  }
  0x4b   : > { %528 = sst [smem:[#allocation9 + $0x4]] (%p698_p9), %s631_s7  ;;  %s633_s5 = smov 131072  }
  0x4c   : > { %529 = sst [smem:[#allocation9 + $0x5]] (%p698_p9), %s632_s13  ;;  %s634_s8 = smov 0  }
  0x4d   : > { %530 = dma.general (%p698_p9), %s408_s28, 4096, %s396_s3, %s383_s23, %s633_s5, [#allocation9], %s634_s8, 0  }
  0x4e PF: > { %s435_s14 = sand.u32 1, %s608_s9   ;;  %p533_p1 = pnand %p495_p11, %p702_p10 }
  0x4f   : > { %s436_s16 = scalar_lea.sflag [#allocation4], %s435_s14 }
  0x50   : > { %p534_p2 = pneg %p533_p1 }
  0x52   : > { %603 = dma.done.wait (%p534_p2), %s436_s16, 4096  }
  0x53   : > { %605 = vsyncadd (%p534_p2), %s436_s16, 4294963200  ;;  %p15_p3 = scmp.ge.s32.totalorder %s675_s15, 4   ;;  %s902_s9 = smov %s612_s10 }
  0x54   : > { %s903_s10 = smov %s616_s11  ;;  %s904_s11 = smov %s687_s18 }
  0x55   : > { %s905_s12 = smov %s675_s15  ;;  %17 = sbr.rel (!%p15_p3) target bundleno = 5 (0x5), region = 83 }
  0x5a   :  { %441 = vsyncpa [#allocation3], 1 }
  0x5b   :  { %443 = vsyncpa [#allocation3 + $0x1], 1 }
  0x5c   :  { %444 = vsyncpa [#allocation4], 1 }
  0x5d   :  { %446 = vsyncpa [#allocation4 + $0x1], 1 }

</bundles_post_ra>
